<compile_context>
chip_gen: v6e
topology: v6e:2x2x1
jax: 0.10.0
libtpu: 0.0.40
codegen_flags: <defaults>
</compile_context>

<pallas_src>
import jax
import jax.numpy as jnp
from jax.experimental import pallas as pl
from jax.experimental.pallas import tpu as pltpu

EPS = 1e-5          # nn.LayerNorm default eps
FF_HIDDEN = 512     # FeedForwardLayer default hidden_dim


def _round_up(a, b):
    return ((a + b - 1) // b) * b


# ------------------------------------------------------------ fused kernel --
def _add_and_norm_kernel(x_ref, a_ref, p_ref, w1_ref, b1_ref, w2_ref, o_ref):
    # Packed (8, D) params: rows 0..4 = g1, be1, b2, g2, be2 (rest is padding).
    p = p_ref[...]
    g1, be1 = p[0:1, :], p[1:2, :]
    b2, g2, be2 = p[2:3, :], p[3:4, :], p[4:5, :]

    def layernorm(z, gamma, beta):
        # One-pass stats: E[z^2] - E[z]^2 (biased variance, like PyTorch LayerNorm).
        mu = jnp.mean(z, axis=-1, keepdims=True)
        var = jnp.mean(z * z, axis=-1, keepdims=True) - mu * mu
        return (z - mu) * jax.lax.rsqrt(var + EPS) * gamma + beta

    nx = layernorm(x_ref[...] + a_ref[...], g1, be1)

    # FeedForward: Linear -> ReLU -> Linear; bf16 operands into the MXU,
    # f32 accumulation.
    h = jnp.dot(nx.astype(jnp.bfloat16), w1_ref[...],
                preferred_element_type=jnp.float32) + b1_ref[...]
    h = jnp.maximum(h, 0.0)
    ff = jnp.dot(h.astype(jnp.bfloat16), w2_ref[...],
                 preferred_element_type=jnp.float32) + b2

    o_ref[...] = layernorm(nx + ff, g2, be2)


def add_and_norm(x, addx, params, *, row_tile=1024):
    """Fused AddAndNorm forward.  x/addx: (..., D) float32."""
    p_vec, w1, b1, w2 = params
    orig_shape = x.shape
    D = orig_shape[-1]
    H = w1.shape[1]

    x2 = x.reshape(-1, D)
    a2 = addx.reshape(-1, D)
    M = x2.shape[0]

    # Tile selection: tm is a multiple of 8, <= row_tile, and the grid has at
    # least 2 "parallel" steps whenever there are >= 16 rows (keeps both v7x
    # TensorCores busy).  Rows are padded so tm divides the row count exactly:
    # no masked partial stores, no wasted work on a ragged last tile.
    Mp8 = _round_up(max(M, 1), 8)
    num_tiles = 1 if Mp8 <= 8 else max(2, pl.cdiv(Mp8, row_tile))
    tm = _round_up(pl.cdiv(Mp8, num_tiles), 8)
    Mpad = num_tiles * tm
    if Mpad != M:
        x2 = jnp.pad(x2, ((0, Mpad - M), (0, 0)))
        a2 = jnp.pad(a2, ((0, Mpad - M), (0, 0)))

    row_spec = pl.BlockSpec((tm, D), lambda i: (i, 0))
    rep = lambda shape: pl.BlockSpec(shape, lambda i: (0, 0))   # replicated params

    # Explicit VMEM budget (matters on v7x: 64 MiB physical, 32 MiB default scoped
    # limit).  Only raise the scoped limit if the chosen tile actually needs it.
    est_vmem = (3 * 2 * tm * D * 4                 # x / a / out tiles, double-buffered
                + 2 * 2 * (D * H + H * D)          # bf16 weights, double-buffered
                + tm * H * 4 + 2 * tm * D * 4      # hidden + intermediates
                + 2 * (8 * D + H) * 4)             # packed vectors + b1
    cp = dict(dimension_semantics=("parallel",))
    if est_vmem > 30 * 1024 * 1024:
        cp["vmem_limit_bytes"] = min(est_vmem + (8 << 20), 60 * 1024 * 1024)

    out = pl.pallas_call(
        _add_and_norm_kernel,
        out_shape=jax.ShapeDtypeStruct((Mpad, D), jnp.float32),
        grid=(num_tiles,),
        in_specs=[row_spec, row_spec,
                  rep((8, D)),        # packed g1 / be1 / b2 / g2 / be2
                  rep((D, H)),        # w1 (bf16, x @ W form)
                  rep((1, H)),        # b1
                  rep((H, D))],       # w2 (bf16, x @ W form)
        out_specs=row_spec,
        compiler_params=pltpu.CompilerParams(**cp),
    )(x2, a2, p_vec, w1, b1, w2)

    return out[:M].reshape(orig_shape)


# ---------------------------------------------------- pure-JAX reference ----
def _layernorm_ref(z, g, b):
    mu = z.mean(-1, keepdims=True)
    var = ((z - mu) ** 2).mean(-1, keepdims=True)
    return (z - mu) / jnp.sqrt(var + EPS) * g + b


def reference_forward(x, addx, params):
    p_vec, w1, b1, w2 = params
    g1, be1 = p_vec[0:1], p_vec[1:2]
    b2, g2, be2 = p_vec[2:3], p_vec[3:4], p_vec[4:5]
    w1f = w1.astype(jnp.float32)
    w2f = w2.astype(jnp.float32)
    nx = _layernorm_ref(x + addx, g1, be1)
    ff = jnp.maximum(nx @ w1f + b1, 0.0) @ w2f + b2
    return _layernorm_ref(nx + ff, g2, be2)


# ---------------------------------------------------------------- params ----
def init_params(key, input_dim, hidden_dim=FF_HIDDEN):
    k1, k2, k3, k4 = jax.random.split(key, 4)
    w = lambda k, s: jax.random.normal(k, s, jnp.float32) * 0.05
    g1 = jnp.ones((1, input_dim), jnp.float32)    # norm1 gamma
    be1 = jnp.zeros((1, input_dim), jnp.float32)  # norm1 beta
    b2 = w(k4, (1, input_dim))                    # linear2 bias
    g2 = jnp.ones((1, input_dim), jnp.float32)    # norm2 gamma
    be2 = jnp.zeros((1, input_dim), jnp.float32)  # norm2 beta
    pad = jnp.zeros((3, input_dim), jnp.float32)
    p_vec = jnp.concatenate([g1, be1, b2, g2, be2, pad], axis=0)   # (8, D)
    w1 = w(k1, (input_dim, hidden_dim)).astype(jnp.bfloat16)       # linear1 W, x@W form
    b1 = w(k2, (1, hidden_dim))                                    # linear1 bias
    w2 = w(k3, (hidden_dim, input_dim)).astype(jnp.bfloat16)       # linear2 W, x@W form
    return (p_vec, w1, b1, w2)


if __name__ == "__main__":
    batch, seq, input_dim = 2, 8, 128            # lane-dense feature dim

    key = jax.random.PRNGKey(0)
    kp, kx, ka = jax.random.split(key, 3)
    params = init_params(kp, input_dim)

    x = jax.random.normal(kx, (batch, seq, input_dim), jnp.float32)
    addx = jax.random.normal(ka, (batch, seq, input_dim), jnp.float32)

    out = add_and_norm(x, addx, params)
    out = jax.block_until_ready(out)

    ref = reference_forward(x, addx, params)
    err = float(jnp.max(jnp.abs(out - ref)))
    # bf16 matmul operands on the MXU -> relaxed tolerance vs the f32 reference.
    assert jnp.allclose(out, ref, atol=2e-2, rtol=2e-2), f"max abs err {err}"

    print("KERNEL_OK")
</pallas_src>

<mosaic_0001>
module attributes {stable_mosaic.version = 11 : i64} {
  func.func @_add_and_norm_kernel(%arg0: i32, %arg1: memref<8x128xf32, #tpu.memory_space<vmem>>, %arg2: memref<8x128xf32, #tpu.memory_space<vmem>>, %arg3: memref<8x128xf32, #tpu.memory_space<vmem>>, %arg4: memref<128x512xbf16, #tpu.memory_space<vmem>>, %arg5: memref<1x512xf32, #tpu.memory_space<vmem>>, %arg6: memref<512x128xbf16, #tpu.memory_space<vmem>>, %arg7: memref<8x128xf32, #tpu.memory_space<vmem>>) attributes {dimension_semantics = [#tpu.dimension_semantics<parallel>], iteration_bounds = array<i64: 2>, scalar_prefetch = 0 : i64, scratch_operands = 0 : i64, tpu.core_type = #tpu.core_type<tc>, window_params = [{transform_indices = @transform_0, window_bounds = array<i64: 8, 128>}, {transform_indices = @transform_1, window_bounds = array<i64: 8, 128>}, {pipeline_mode = #tpu.pipeline_mode<synchronous>, transform_indices = @transform_2, window_bounds = array<i64: 8, 128>}, {pipeline_mode = #tpu.pipeline_mode<synchronous>, transform_indices = @transform_3, window_bounds = array<i64: 128, 512>}, {pipeline_mode = #tpu.pipeline_mode<synchronous>, transform_indices = @transform_4, window_bounds = array<i64: 1, 512>}, {pipeline_mode = #tpu.pipeline_mode<synchronous>, transform_indices = @transform_5, window_bounds = array<i64: 512, 128>}, {transform_indices = @transform_6, window_bounds = array<i64: 8, 128>}]} {
    %c0 = arith.constant 0 : index
    %c0_0 = arith.constant 0 : index
    %0 = vector.load %arg3[%c0, %c0_0] : memref<8x128xf32, #tpu.memory_space<vmem>>, vector<8x128xf32>
    %1 = vector.extract_strided_slice %0 {offsets = [0, 0], sizes = [1, 128], strides = [1, 1]} : vector<8x128xf32> to vector<1x128xf32>
    %2 = vector.extract_strided_slice %0 {offsets = [1, 0], sizes = [1, 128], strides = [1, 1]} : vector<8x128xf32> to vector<1x128xf32>
    %3 = vector.extract_strided_slice %0 {offsets = [2, 0], sizes = [1, 128], strides = [1, 1]} : vector<8x128xf32> to vector<1x128xf32>
    %4 = vector.extract_strided_slice %0 {offsets = [3, 0], sizes = [1, 128], strides = [1, 1]} : vector<8x128xf32> to vector<1x128xf32>
    %5 = vector.extract_strided_slice %0 {offsets = [4, 0], sizes = [1, 128], strides = [1, 1]} : vector<8x128xf32> to vector<1x128xf32>
    %c0_1 = arith.constant 0 : index
    %c0_2 = arith.constant 0 : index
    %6 = vector.load %arg1[%c0_1, %c0_2] : memref<8x128xf32, #tpu.memory_space<vmem>>, vector<8x128xf32>
    %c0_3 = arith.constant 0 : index
    %c0_4 = arith.constant 0 : index
    %7 = vector.load %arg2[%c0_3, %c0_4] : memref<8x128xf32, #tpu.memory_space<vmem>>, vector<8x128xf32>
    %8 = arith.addf %6, %7 : vector<8x128xf32>
    %cst = arith.constant dense<0.000000e+00> : vector<8xf32>
    %9 = vector.multi_reduction <add>, %8, %cst [1] : vector<8x128xf32> to vector<8xf32>
    %10 = vector.shape_cast %9 : vector<8xf32> to vector<8x1xf32>
    %cst_5 = arith.constant 1.280000e+02 : f32
    %11 = vector.broadcast %cst_5 : f32 to vector<8x1xf32>
    %12 = arith.divf %10, %11 : vector<8x1xf32>
    %13 = arith.mulf %8, %8 : vector<8x128xf32>
    %cst_6 = arith.constant dense<0.000000e+00> : vector<8xf32>
    %14 = vector.multi_reduction <add>, %13, %cst_6 [1] : vector<8x128xf32> to vector<8xf32>
    %15 = vector.shape_cast %14 : vector<8xf32> to vector<8x1xf32>
    %cst_7 = arith.constant 1.280000e+02 : f32
    %16 = vector.broadcast %cst_7 : f32 to vector<8x1xf32>
    %17 = arith.divf %15, %16 : vector<8x1xf32>
    %18 = arith.mulf %12, %12 : vector<8x1xf32>
    %19 = arith.subf %17, %18 : vector<8x1xf32>
    %20 = vector.broadcast %12 : vector<8x1xf32> to vector<8x128xf32>
    %21 = arith.subf %8, %20 : vector<8x128xf32>
    %cst_8 = arith.constant 9.99999974E-6 : f32
    %22 = vector.broadcast %cst_8 : f32 to vector<8x1xf32>
    %23 = arith.addf %19, %22 : vector<8x1xf32>
    %24 = math.rsqrt %23 : vector<8x1xf32>
    %25 = vector.broadcast %24 : vector<8x1xf32> to vector<8x128xf32>
    %26 = arith.mulf %21, %25 : vector<8x128xf32>
    %27 = vector.broadcast %1 : vector<1x128xf32> to vector<8x128xf32>
    %28 = arith.mulf %26, %27 : vector<8x128xf32>
    %29 = vector.broadcast %2 : vector<1x128xf32> to vector<8x128xf32>
    %30 = arith.addf %28, %29 : vector<8x128xf32>
    %31 = arith.truncf %30 : vector<8x128xf32> to vector<8x128xbf16>
    %c0_9 = arith.constant 0 : index
    %c0_10 = arith.constant 0 : index
    %32 = vector.load %arg4[%c0_9, %c0_10] : memref<128x512xbf16, #tpu.memory_space<vmem>>, vector<128x512xbf16>
    %cst_11 = arith.constant dense<0.000000e+00> : vector<8x512xf32>
    %33 = tpu.matmul %31, %32, %cst_11 {dimension_numbers = #tpu.dot_dimension_numbers<[1], [0], [0], [1], [0, 0, 1, 1], [], []>} : vector<8x128xbf16>, vector<128x512xbf16>, vector<8x512xf32> -> vector<8x512xf32>
    %c0_12 = arith.constant 0 : index
    %c0_13 = arith.constant 0 : index
    %34 = vector.load %arg5[%c0_12, %c0_13] : memref<1x512xf32, #tpu.memory_space<vmem>>, vector<1x512xf32>
    %35 = vector.broadcast %34 : vector<1x512xf32> to vector<8x512xf32>
    %36 = arith.addf %33, %35 : vector<8x512xf32>
    %cst_14 = arith.constant 0.000000e+00 : f32
    %37 = vector.broadcast %cst_14 : f32 to vector<8x512xf32>
    %38 = arith.maximumf %36, %37 : vector<8x512xf32>
    %39 = arith.truncf %38 : vector<8x512xf32> to vector<8x512xbf16>
    %c0_15 = arith.constant 0 : index
    %c0_16 = arith.constant 0 : index
    %40 = vector.load %arg6[%c0_15, %c0_16] : memref<512x128xbf16, #tpu.memory_space<vmem>>, vector<512x128xbf16>
    %cst_17 = arith.constant dense<0.000000e+00> : vector<8x128xf32>
    %41 = tpu.matmul %39, %40, %cst_17 {dimension_numbers = #tpu.dot_dimension_numbers<[1], [0], [0], [1], [0, 0, 1, 1], [], []>} : vector<8x512xbf16>, vector<512x128xbf16>, vector<8x128xf32> -> vector<8x128xf32>
    %42 = vector.broadcast %3 : vector<1x128xf32> to vector<8x128xf32>
    %43 = arith.addf %41, %42 : vector<8x128xf32>
    %44 = arith.addf %30, %43 : vector<8x128xf32>
    %cst_18 = arith.constant dense<0.000000e+00> : vector<8xf32>
    %45 = vector.multi_reduction <add>, %44, %cst_18 [1] : vector<8x128xf32> to vector<8xf32>
    %46 = vector.shape_cast %45 : vector<8xf32> to vector<8x1xf32>
    %cst_19 = arith.constant 1.280000e+02 : f32
    %47 = vector.broadcast %cst_19 : f32 to vector<8x1xf32>
    %48 = arith.divf %46, %47 : vector<8x1xf32>
    %49 = arith.mulf %44, %44 : vector<8x128xf32>
    %cst_20 = arith.constant dense<0.000000e+00> : vector<8xf32>
    %50 = vector.multi_reduction <add>, %49, %cst_20 [1] : vector<8x128xf32> to vector<8xf32>
    %51 = vector.shape_cast %50 : vector<8xf32> to vector<8x1xf32>
    %cst_21 = arith.constant 1.280000e+02 : f32
    %52 = vector.broadcast %cst_21 : f32 to vector<8x1xf32>
    %53 = arith.divf %51, %52 : vector<8x1xf32>
    %54 = arith.mulf %48, %48 : vector<8x1xf32>
    %55 = arith.subf %53, %54 : vector<8x1xf32>
    %56 = vector.broadcast %48 : vector<8x1xf32> to vector<8x128xf32>
    %57 = arith.subf %44, %56 : vector<8x128xf32>
    %cst_22 = arith.constant 9.99999974E-6 : f32
    %58 = vector.broadcast %cst_22 : f32 to vector<8x1xf32>
    %59 = arith.addf %55, %58 : vector<8x1xf32>
    %60 = math.rsqrt %59 : vector<8x1xf32>
    %61 = vector.broadcast %60 : vector<8x1xf32> to vector<8x128xf32>
    %62 = arith.mulf %57, %61 : vector<8x128xf32>
    %63 = vector.broadcast %4 : vector<1x128xf32> to vector<8x128xf32>
    %64 = arith.mulf %62, %63 : vector<8x128xf32>
    %65 = vector.broadcast %5 : vector<1x128xf32> to vector<8x128xf32>
    %66 = arith.addf %64, %65 : vector<8x128xf32>
    %c0_23 = arith.constant 0 : index
    %c0_24 = arith.constant 0 : index
    %67 = vector.load %arg7[%c0_23, %c0_24] : memref<8x128xf32, #tpu.memory_space<vmem>>, vector<8x128xf32>
    tpu.vector_store %arg7[%c0_23, %c0_24], %66 {strides = array<i32>} : memref<8x128xf32, #tpu.memory_space<vmem>>, vector<8x128xf32>,
    return
  }
  func.func @transform_0(%arg0: i32) -> (i32, i32) {
    %c0_i32 = arith.constant 0 : i32
    %c0_i32_0 = arith.constant 0 : i32
    return %arg0, %c0_i32 : i32, i32
  }
  func.func @transform_1(%arg0: i32) -> (i32, i32) {
    %c0_i32 = arith.constant 0 : i32
    %c0_i32_0 = arith.constant 0 : i32
    return %arg0, %c0_i32 : i32, i32
  }
  func.func @transform_2(%arg0: i32) -> (i32, i32) {
    %c0_i32 = arith.constant 0 : i32
    %c0_i32_0 = arith.constant 0 : i32
    %c0_i32_1 = arith.constant 0 : i32
    return %c0_i32, %c0_i32_0 : i32, i32
  }
  func.func @transform_3(%arg0: i32) -> (i32, i32) {
    %c0_i32 = arith.constant 0 : i32
    %c0_i32_0 = arith.constant 0 : i32
    %c0_i32_1 = arith.constant 0 : i32
    return %c0_i32, %c0_i32_0 : i32, i32
  }
  func.func @transform_4(%arg0: i32) -> (i32, i32) {
    %c0_i32 = arith.constant 0 : i32
    %c0_i32_0 = arith.constant 0 : i32
    %c0_i32_1 = arith.constant 0 : i32
    return %c0_i32, %c0_i32_0 : i32, i32
  }
  func.func @transform_5(%arg0: i32) -> (i32, i32) {
    %c0_i32 = arith.constant 0 : i32
    %c0_i32_0 = arith.constant 0 : i32
    %c0_i32_1 = arith.constant 0 : i32
    return %c0_i32, %c0_i32_0 : i32, i32
  }
  func.func @transform_6(%arg0: i32) -> (i32, i32) {
    %c0_i32 = arith.constant 0 : i32
    %c0_i32_0 = arith.constant 0 : i32
    return %arg0, %c0_i32 : i32, i32
  }
}

</mosaic_0001>

<bundles_post_ra>
// kernel: tpu_custom_call.1
= control target key start
LH: loop header
LB: loop body
LE: loop exit
PB: predicated region body
PF: predicated region fallthrough
CT: control target
= control target key end

     0   :  { %s1994_s0 = inlined_call_operand.hbm [shape: f32[16,128], index: 0, kind: input, shape index: {}]   ;;  %s1995_s1 = inlined_call_operand.hbm [shape: f32[16,128], index: 1, kind: input, shape index: {}]   ;;  %s1996_s2 = inlined_call_operand.hbm [shape: f32[8,128], index: 2, kind: input, shape index: {}]   ;;  %s1997_s3 = inlined_call_operand.hbm [shape: bf16[128,512], index: 3, kind: input, shape index: {}]   ;;  %s1998_s4 = inlined_call_operand.vmem [shape: f32[1,512], index: 4, kind: input, shape index: {}]   ;;  %s1999_s5 = inlined_call_operand.hbm [shape: bf16[512,128], index: 5, kind: input, shape index: {}]   ;;  %s2000_s6 = inlined_call_operand.hbm [shape: f32[16,128], index: 6, kind: output, shape index: {}]  }
   0x1   :  { %2005 = sst [smem:[#allocation17_spill]] %s1996_s2 }
   0x2   :  { %2006 = sst [smem:[#allocation18_spill]] %s1997_s3 }
   0x3   :  { %2007 = sst [smem:[#allocation19_spill]] %s1999_s5 }
   0x4   :  { %11 = vsyncpa [#allocation3], 0 }
   0x5   :  { %13 = vsyncpa [#allocation3 + $0x1], 0 }
   0x6   :  { %14 = vsyncpa [#allocation6], 0 }
   0x7   :  { %16 = vsyncpa [#allocation6 + $0x1], 0 }
   0x8   :  { %17 = vsyncpa [#allocation9], 0 }
   0x9   :  { %18 = vsyncpa [#allocation4], 0 }
   0xa   :  { %20 = vsyncpa [#allocation4 + $0x1], 0  ;;  %s1737_s21 = smov 0   ;;  %s1739_s22 = smov 0  }
   0xb   :  { %s1741_s23 = smov 0   ;;  %s1743_s24 = smov 0  }
   0xc LB: > { %s1758_s25 = sadd.s32 4294967295, %s1689_s24   ;;  %s1179_s26 = sadd.s32 4294967294, %s1689_s24   ;;  %s1689_s24 = sphi %s1743_s24, %s2030_s24   ;;  %s1685_s23 = sphi %s1741_s23, %s2029_s23   ;;  %s1681_s22 = sphi %s1739_s22, %s2028_s22   ;;  %s1677_s21 = sphi %s1737_s21, %s2027_s21  }
   0xd   : > { %p46_p0 = scmp.ne.s32.totalorder %s1681_s22, %s1677_s21  ;;  %p2001_p1 = scmp.eq.s32.totalorder %s1758_s25, 0 }
   0xe   : > { %p186_p3 = scmp.eq.s32.totalorder %s1179_s26, 1  ;;  %p1180_p5 = scmp.ge.s32.totalorder %s1689_s24, 1 }
   0xf   : > { %p1767_p4 = por %p2001_p1, %p46_p0  ;;  %p193_p7 = scmp.lt.s32.totalorder %s1689_s24, 3 }
  0x10   : > { %p1772_p6 = por %p186_p3, %p46_p0  ;;  %s1691_s30 = smov [#allocation7]  }
  0x11   : > { %s2008_s27 = scalar_select %p1767_p4, 1, 0 }
  0x12   : > { %s2009_s28 = scalar_select %p1772_p6, 1, 0 }
  0x13   : > { %p1777_p8 = pnand %p1180_p5, %p193_p7  ;;  %s206_s7 = sshll.u32 %s1691_s30, 4  ;;  %s207_s7 = int_to_ptr.vmem [resolvable:$true] %s206_s7 }
  0x14   : > { %s1692_s8 = smov [#allocation8]   ;;  %s1693_s11 = smov [#allocation10]  }
  0x15   : > { %s2010_s29 = scalar_select %p1777_p8, 1, 0 }
  0x16   : > { %p1326_p10 = pneg %p1777_p8  ;;  %s216_s9 = sshll.u32 %s1692_s8, 4  ;;  %s217_s9 = int_to_ptr.vmem [resolvable:$true] %s216_s9 }
  0x17   : > { %s232_s12 = sshll.u32 %s1693_s11, 4  ;;  %s1490_s13 = scalar_lea.vmem %s207_s7, 128  ;;  %s233_s12 = int_to_ptr.vmem [resolvable:$true] %s232_s12 }
  0x18   : > { %p1786_p11 = pnand %p1326_p10, %p2001_p1  ;;  %p1491_p13 = scmp.ne.s32.totalorder %s207_s7, %s1490_s13 }
  0x19   : > { %p1498_p5 = scmp.lt.s32.totalorder %s207_s7, %s207_s7  ;;  %p1499_p7 = scmp.lt.s32.totalorder %s1490_s13, %s1490_s13 }
  0x1a   : > { %p1481_p12 = pneg %p1786_p11 }
  0x1b   : > { %p1500_p9 = por %p1499_p7, %p1498_p5 }
  0x1c   : > { %p1493_p0 = pnand %p1491_p13, %p1481_p12 }
  0x1e   : > { %p1494_p3 = pneg %p1493_p0 }
  0x20   : > { %p1501_p10 = pnand %p1500_p9, %p1494_p3 }
  0x22   : > { %1504 = shalt.err (!%p1501_p10)
}
  0x23   : > { %s2012_s2 = sld [smem:[#allocation17_spill]]  ;;  %s1516_s16 = scalar_lea.vmem %s217_s9, 4096 }
  0x24   : > { %p1517_p1 = scmp.ne.s32.totalorder %s217_s9, %s1516_s16  ;;  %p1524_p13 = scmp.lt.s32.totalorder %s217_s9, %s217_s9 }
  0x25   : > { %p1525_p0 = scmp.lt.s32.totalorder %s1516_s16, %s1516_s16 }
  0x26   : > { %p1519_p2 = pnand %p1517_p1, %p1481_p12 }
  0x27   : > { %p1526_p4 = por %p1525_p0, %p1524_p13 }
  0x28   : > { %p1520_p6 = pneg %p1519_p2 }
  0x29   : > { %1329 = dma.hbm_to_vmem [thread:$0]  (!%p1786_p11), %s2012_s2, 128, %s207_s7, [#allocation6]  }
  0x2a   : > { %p1527_p8 = pnand %p1526_p4, %p1520_p6 }
  0x2c   : > { %1530 = shalt.err (!%p1527_p8)
}
  0x2d   : > { %s1694_s17 = smov 256   ;;  %s1695_s18 = smov 16  }
  0x2e   : > { %s2013_s3 = sld [smem:[#allocation18_spill]]  ;;  %s1542_s26 = scalar_lea.vmem %s233_s12, 4096 }
  0x2f   : > { %p1543_p9 = scmp.ne.s32.totalorder %s233_s12, %s1542_s26  ;;  %p1550_p3 = scmp.lt.s32.totalorder %s233_s12, %s233_s12 }
  0x30   : > { %p1551_p5 = scmp.lt.s32.totalorder %s1542_s26, %s1542_s26 }
  0x31   : > { %p1545_p1 = pnand %p1543_p9, %p1481_p12 }
  0x32   : > { %p1552_p4 = por %p1551_p5, %p1550_p3 }
  0x33   : > { %p1546_p2 = pneg %p1545_p1 }
  0x34   : > { %1332 = dma.hbm_to_vmem [thread:$0]  (!%p1786_p11), %s2013_s3, 4096, %s217_s9, [#allocation9], %s1694_s17, %s1694_s17, %s1695_s18  }
  0x35   : > { %p1553_p6 = pnand %p1552_p4, %p1546_p2 }
  0x37   : > { %1556 = shalt.err (!%p1553_p6)
}
  0x38   : > { %s1696_s30 = smov 64   ;;  %s1697_s7 = smov 4  }
  0x39   : > { %s2014_s5 = sld [smem:[#allocation19_spill]]  ;;  %s1817_s11 = sadd.s32 1, %s1689_s24  }
  0x3a   : > { %s30_s13 = ssub.s32 %s1689_s24, %s1817_s11  ;;  %s33_s14 = sadd.s32 1, %s1685_s23 }
  0x3b   : > { %p31_p8 = scmp.eq.s32.totalorder %s30_s13, 0  ;;  %p40_p12 = scmp.ne.s32.totalorder %s1685_s23, %s1681_s22 }
  0x3c   : > { %p41_p7 = scmp.eq.s32.totalorder %s1689_s24, 0  ;;  %p1350_p10 = scmp.lt.s32.totalorder %s1689_s24, 2 }
  0x3d   : > { %s1827_s15 = scalar_select %p31_p8, %s1685_s23, %s33_s14  }
  0x3e   : > { %p42_p13 = por %p41_p7, %p40_p12  ;;  %p2015_p0 = scmp.eq.s32.totalorder %s1758_s25, 1 }
  0x3f   : > { %1335 = dma.hbm_to_vmem [thread:$0]  (!%p1786_p11), %s2014_s5, 4096, %s233_s12, [#allocation9], %s1696_s30, %s1696_s30, %s1697_s7  }
  0x40   : > { %p1831_p9 = por %p2015_p0, %p40_p12  ;;  %s246_s10 = sand.u32 1, %s1685_s23  }
  0x41   : > { %s1186_s17 = sshll.u32 %s1689_s24, 7  ;;  %s1837_s12 = sshll.u32 %s246_s10, 3 }
  0x42   : > { %s2016_s16 = scalar_select %p1831_p9, 1, 0 }
  0x43   : > { %s1842_s20 = scalar_lea.hbm %s1994_s0, %s1186_s17  ;;  %s250_s26 = scalar_lea.vmem [#allocation2], %s1837_s12 }
  0x44   : > { %s257_s30 = sshll.u32 %s250_s26, 4  ;;  %p1845_p11 = pnand %p1350_p10, %p42_p13  ;;  %s258_s30 = int_to_ptr.vmem [resolvable:$true] %s257_s30 }
  0x45   : > { %s1852_s13 = scalar_lea.hbm %s1995_s1, %s1186_s17  ;;  %s247_s14 = scalar_lea.sflag [#allocation3], %s246_s10 }
  0x46   : > { %s1557_s18 = scalar_lea.hbm %s1842_s20, 128  ;;  %p1559_p2 = pneg %p1845_p11 }
  0x47   : > { %p1558_p1 = scmp.ne.s32.totalorder %s1842_s20, %s1557_s18  ;;  %s1562_s2 = scalar_lea.hbm %s1994_s0, 256 }
  0x48   : > { %p1563_p4 = scmp.lt.s32.totalorder %s1842_s20, %s1994_s0  ;;  %p1564_p6 = scmp.lt.s32.totalorder %s1562_s2, %s1557_s18 }
  0x49   : > { %p1560_p3 = pnand %p1559_p2, %p1558_p1 }
  0x4a   : > { %p1565_p8 = por %p1564_p6, %p1563_p4 }
  0x4b   : > { %p1561_p5 = pneg %p1560_p3 }
  0x4d   : > { %p1566_p12 = pnand %p1565_p8, %p1561_p5 }
  0x4f   : > { %1569 = shalt.err (!%p1566_p12)
}
  0x50   : > { %s1570_s10 = scalar_lea.vmem %s258_s30, 128  ;;  %s1698_s17 = smov [#allocation2]  }
  0x51   : > { %p1571_p7 = scmp.ne.s32.totalorder %s258_s30, %s1570_s10  ;;  %s1575_s8 = sshll.u32 %s1698_s17, 4  ;;  %s1576_s8 = int_to_ptr.vmem [resolvable:$false] %s1575_s8 }
  0x52   : > { %s1577_s9 = scalar_lea.vmem %s1576_s8, 256  ;;  %p1578_p0 = scmp.lt.s32.totalorder %s258_s30, %s1576_s8 }
  0x53   : > { %p1573_p10 = pnand %p1571_p7, %p1559_p2  ;;  %p1579_p1 = scmp.lt.s32.totalorder %s1577_s9, %s1570_s10 }
  0x55   : > { %p1574_p13 = pneg %p1573_p10  ;;  %p1580_p3 = por %p1579_p1, %p1578_p0 }
  0x57   : > { %p1581_p9 = pnand %p1580_p3, %p1574_p13 }
  0x59   : > { %1584 = shalt.err (!%p1581_p9)
}
  0x5a   : > { %1339 = dma.hbm_to_vmem [thread:$0]  (!%p1845_p11), %s1842_s20, 128, %s258_s30, %s247_s14  }
  0x5b   : > { %s264_s2 = sand.u32 1, %s1689_s24   ;;  %s268_s3 = scalar_lea.vmem [#allocation5], %s1837_s12 }
  0x5c   : > { %s275_s5 = sshll.u32 %s268_s3, 4  ;;  %s265_s18 = scalar_lea.sflag [#allocation6], %s264_s2  ;;  %s276_s5 = int_to_ptr.vmem [resolvable:$true] %s275_s5 }
  0x5d   : > { %s1585_s19 = scalar_lea.hbm %s1852_s13, 128  ;;  %s1590_s17 = scalar_lea.hbm %s1995_s1, 256 }
  0x5e   : > { %p1586_p5 = scmp.ne.s32.totalorder %s1852_s13, %s1585_s19  ;;  %p1591_p6 = scmp.lt.s32.totalorder %s1852_s13, %s1995_s1 }
  0x5f   : > { %p1592_p8 = scmp.lt.s32.totalorder %s1590_s17, %s1585_s19 }
  0x60   : > { %p1588_p9 = pnand %p1586_p5, %p1559_p2 }
  0x61   : > { %p1593_p12 = por %p1592_p8, %p1591_p6 }
  0x62   : > { %p1589_p4 = pneg %p1588_p9 }
  0x64   : > { %p1594_p7 = pnand %p1593_p12, %p1589_p4 }
  0x66   : > { %1597 = shalt.err (!%p1594_p7)
}
  0x67   : > { %s1598_s12 = scalar_lea.vmem %s276_s5, 128  ;;  %s1699_s20 = smov [#allocation5]  }
  0x68   : > { %p1599_p10 = scmp.ne.s32.totalorder %s276_s5, %s1598_s12  ;;  %s1603_s30 = sshll.u32 %s1699_s20, 4  ;;  %s1604_s30 = int_to_ptr.vmem [resolvable:$false] %s1603_s30 }
  0x69   : > { %s1605_s14 = scalar_lea.vmem %s1604_s30, 256  ;;  %p1606_p1 = scmp.lt.s32.totalorder %s276_s5, %s1604_s30 }
  0x6a   : > { %p1601_p13 = pnand %p1599_p10, %p1559_p2  ;;  %p1607_p3 = scmp.lt.s32.totalorder %s1605_s14, %s1598_s12 }
  0x6c   : > { %p1602_p0 = pneg %p1601_p13  ;;  %p1608_p5 = por %p1607_p3, %p1606_p1 }
  0x6e   : > { %p1609_p9 = pnand %p1608_p5, %p1602_p0 }
  0x70   : > { %1612 = shalt.err (!%p1609_p9)
}
  0x71   : > { %1342 = dma.hbm_to_vmem [thread:$0]  (!%p1845_p11), %s1852_s13, 128, %s276_s5, %s265_s18  }
  0x72   : > { %p2018_p4 = scmp.ne.s32.totalorder %s2010_s29, 0 }
  0x73   : > { %s1897_s2 = sand.u32 (!%p2018_p4), 1, %s1681_s22   ;;  %p2019_p2 = scmp.ne.s32.totalorder (!%p2018_p4), %s2008_s27, 0 }
  0x74   : > { %284 = sbr.rel (%p2018_p4) target bundleno = 891 (0x37b), region = 44  ;;  %s1900_s3 = sshll.u32 (!%p2018_p4), %s1897_s2, 3 }
  0x75   : > { %s287_s19 = scalar_lea.sflag (!%p2018_p4), [#allocation3], %s1897_s2  ;;  %s290_s26 = scalar_lea.vmem (!%p2018_p4), [#allocation2], %s1900_s3 }
  0x79   : > { %1656 = dma.done.wait (%p2019_p2), %s287_s19, 128  }
  0x7a   : > { %1658 = vsyncadd (%p2019_p2), %s287_s19, 4294967168  ;;  %s295_s29 = sand.u32 1, %s1758_s25   ;;  %s299_s13 = scalar_lea.vmem [#allocation5], %s1900_s3 }
  0x7b   : > { %s296_s7 = scalar_lea.sflag [#allocation6], %s295_s29 }
  0x7c   : > { %1660 = dma.done.wait (%p2019_p2), %s296_s7, 128  }
  0x7d   : > { %1662 = vsyncadd (%p2019_p2), %s296_s7, 4294967168  ;;  %p2020_p11 = scmp.eq.s32.totalorder %s1758_s25, 0 }
  0x7f   : > { %1664 = dma.done.wait (%p2020_p11), [#allocation6], 128   ;;  %p2021_p6 = pmov %p2020_p11 }
  0x81   : > { %1666 = vsyncadd (%p2021_p6), [#allocation6], 4294967168  ;;  %p2022_p8 = pmov %p2021_p6 }
  0x82   : > { %p2023_p12 = pmov %p2021_p6 }
  0x83   : > { %1668 = dma.done.wait (%p2022_p8), [#allocation9], 8192  }
  0x84   : > { %1670 = vsyncadd (%p2023_p12), [#allocation9], 4294959104  ;;  %v347_v0 = vld [vmem:[%s290_s26] sm:$0xff]  ;;  %v348_v1 = vld [vmem:[%s299_s13] sm:$0xff]  ;;  %v1700_v32 = vmov 0   ;;  %v364_v46 = vlaneseq  ;;  %s1261_s18 = sshll.u32 %s1758_s25, 7 }
  0x85   : > { %v1922_v2 = vadd.f32 %v348_v1, %v347_v0  ;;  %v1395_v4 = vld [vmem:[#allocation8 + $0xe4] ss:$16 sps:$4 sm:$0xff]   ;;  %v1397_v5 = vld [vmem:[#allocation8 + $0xec] ss:$16 sps:$4 sm:$0xff]   ;;  %v1399_v6 = vld [vmem:[#allocation8 + $0xe0] ss:$16 sps:$4 sm:$0xff]   ;;  %621 = vmatprep.mubr.bf16.mxu0 %v1700_v32  ;;  %662 = vmatprep.mubr.bf16.mxu1 %v1700_v32  ;;  %s1056_s12 = scalar_lea.hbm %s2000_s6, %s1261_s18 }
  0x86   : > { %v1400_v7 = vld [vmem:[#allocation8 + $0xe8] ss:$16 sps:$4 sm:$0xff]   ;;  %589 = vmatprep.subr.bf16.mxu0 %v1395_v4  ;;  %630 = vmatprep.subr.bf16.mxu1 %v1397_v5  ;;  %v1401_v8 = vld [vmem:[#allocation8 + $0xc4] ss:$16 sps:$4 sm:$0xff]   ;;  %v1403_v9 = vld [vmem:[#allocation8 + $0xcc] ss:$16 sps:$4 sm:$0xff]  }
  0x87   : > { %350 = vadd.xlane.f32.xlu0 %v1922_v2  ;;  %v354_v3 = vmul.f32 %v1922_v2, %v1922_v2  ;;  %590 = vmatpush1.bf16.msra.mxu0 %v1399_v6  ;;  %v1405_v10 = vld [vmem:[#allocation8 + $0xc0] ss:$16 sps:$4 sm:$0xff]   ;;  %v1406_v11 = vld [vmem:[#allocation8 + $0xc8] ss:$16 sps:$4 sm:$0xff]   ;;  %v1407_v12 = vld [vmem:[#allocation8 + $0xa4] ss:$16 sps:$4 sm:$0xff]  }
  0x88   : > { %631 = vmatpush1.bf16.msra.mxu1 %v1400_v7  ;;  %591 = vmatprep.subr.bf16.mxu0 %v1401_v8  ;;  %v1409_v13 = vld [vmem:[#allocation8 + $0xac] ss:$16 sps:$4 sm:$0xff]   ;;  %v1411_v14 = vld [vmem:[#allocation8 + $0xa0] ss:$16 sps:$4 sm:$0xff]   ;;  %v1412_v15 = vld [vmem:[#allocation8 + $0xa8] ss:$16 sps:$4 sm:$0xff]  }
  0x89   : > { %632 = vmatprep.subr.bf16.mxu1 %v1403_v9  ;;  %v1413_v16 = vld [vmem:[#allocation8 + $0x84] ss:$16 sps:$4 sm:$0xff]   ;;  %v1415_v17 = vld [vmem:[#allocation8 + $0x8c] ss:$16 sps:$4 sm:$0xff]   ;;  %v1417_v18 = vld [vmem:[#allocation8 + $0x80] ss:$16 sps:$4 sm:$0xff]  }
  0x8a   : > { %v1418_v19 = vld [vmem:[#allocation8 + $0x88] ss:$16 sps:$4 sm:$0xff]   ;;  %v1419_v20 = vld [vmem:[#allocation8 + $0x64] ss:$16 sps:$4 sm:$0xff]   ;;  %v1421_v21 = vld [vmem:[#allocation8 + $0x6c] ss:$16 sps:$4 sm:$0xff]  }
  0x8b   : > { %355 = vadd.xlane.f32.xlu0 %v354_v3  ;;  %592 = vmatpush1.bf16.msra.mxu0 %v1405_v10  ;;  %v1423_v22 = vld [vmem:[#allocation8 + $0x60] ss:$16 sps:$4 sm:$0xff]   ;;  %v1424_v23 = vld [vmem:[#allocation8 + $0x68] ss:$16 sps:$4 sm:$0xff]   ;;  %v1425_v24 = vld [vmem:[#allocation8 + $0x44] ss:$16 sps:$4 sm:$0xff]  }
  0x8c   : > { %633 = vmatpush1.bf16.msra.mxu1 %v1406_v11  ;;  %593 = vmatprep.subr.bf16.mxu0 %v1407_v12  ;;  %v1427_v25 = vld [vmem:[#allocation8 + $0x4c] ss:$16 sps:$4 sm:$0xff]   ;;  %v1429_v26 = vld [vmem:[#allocation8 + $0x40] ss:$16 sps:$4 sm:$0xff]   ;;  %v1430_v27 = vld [vmem:[#allocation8 + $0x48] ss:$16 sps:$4 sm:$0xff]  }
  0x8d   : > { %634 = vmatprep.subr.bf16.mxu1 %v1409_v13  ;;  %v1431_v28 = vld [vmem:[#allocation8 + $0x24] ss:$16 sps:$4 sm:$0xff]   ;;  %v1433_v29 = vld [vmem:[#allocation8 + $0x2c] ss:$16 sps:$4 sm:$0xff]   ;;  %v1435_v30 = vld [vmem:[#allocation8 + $0x20] ss:$16 sps:$4 sm:$0xff]  }
  0x8e   : > { %v1436_v31 = vld [vmem:[#allocation8 + $0x28] ss:$16 sps:$4 sm:$0xff]   ;;  %v1437_v33 = vld [vmem:[#allocation8 + $0x4] ss:$16 sps:$4 sm:$0xff]   ;;  %v1439_v34 = vld [vmem:[#allocation8 + $0xc] ss:$16 sps:$4 sm:$0xff]  }
  0x8f   : > { %594 = vmatpush1.bf16.msra.mxu0 %v1411_v14  ;;  %v1441_v35 = vld [vmem:[#allocation8] ss:$16 sps:$4 sm:$0xff]   ;;  %v1442_v36 = vld [vmem:[#allocation8 + $0x8] ss:$16 sps:$4 sm:$0xff]   ;;  %v1927_v47 = vshrl.u32 %v364_v46, 7  ;;  %s344_s10 = scalar_lea.vmem [#allocation11], %s1900_s3 }
  0x90   : > { %635 = vmatpush1.bf16.msra.mxu1 %v1412_v15  ;;  %595 = vmatprep.subr.bf16.mxu0 %v1413_v16  ;;  %v1443_v37 = vld [vmem:[#allocation10 + $0x78] sm:$0xff]   ;;  %v1447_v61 = vld [vmem:[#allocation10 + $0x70] sm:$0xff]   ;;  %v1451_v1 = vld [vmem:[#allocation10 + $0x68] sm:$0xff]   ;;  %s1058_s17 = sshll.u32 %s344_s10, 4  ;;  %s1045_s20 = scalar_lea.sflag [#allocation4], %s1897_s2  ;;  %s1059_s17 = int_to_ptr.vmem [resolvable:$true] %s1058_s17 }
  0x91   : > { %636 = vmatprep.subr.bf16.mxu1 %v1415_v17  ;;  %v1444_v38 = vld [vmem:[#allocation10 + $0xf8] sm:$0xff]   ;;  %v366_v48 = vsub.s32 0, %v1927_v47  ;;  %v371_v50 = vsub.s32 1, %v1927_v47  ;;  %v1448_v62 = vld [vmem:[#allocation10 + $0xf0] sm:$0xff]   ;;  %v1453_v3 = vld [vmem:[#allocation10 + $0x28] sm:$0xff]   ;;  %s1613_s30 = scalar_lea.vmem %s1059_s17, 128 }
  0x92   : > { %v1930_v49 = vld [vmem:[#allocation7] sm:$0xff]  ;;  %v1449_v63 = vld [vmem:[#allocation10 + $0x30] sm:$0xff]   ;;  %v1454_v4 = vld [vmem:[#allocation10 + $0xa8] sm:$0xff]   ;;  %p1614_p7 = scmp.ne.s32.totalorder %s1059_s17, %s1613_s30  ;;  %p2024_p10 = scmp.ne.s32.totalorder %s2016_s16, 0 }
  0x93   : > { %596 = vmatpush1.bf16.msra.mxu0 %v1417_v18  ;;  %v367_v52 = vrot.slane %v1930_v49, %v366_v48  ;;  %v372_v55 = vrot.slane %v1930_v49, %v371_v50  ;;  %v1445_v58 = vld [vmem:[#allocation10 + $0x38] sm:$0xff]   ;;  %v1450_v0 = vld [vmem:[#allocation10 + $0xb0] sm:$0xff]   ;;  %v1455_v5 = vld [vmem:[#allocation10 + $0x60] sm:$0xff]   ;;  %s1701_s14 = smov [#allocation11]  }
  0x94   : > { %637 = vmatpush1.bf16.msra.mxu1 %v1418_v19  ;;  %597 = vmatprep.subr.bf16.mxu0 %v1419_v20  ;;  %v1446_v59 = vld [vmem:[#allocation10 + $0xb8] sm:$0xff]   ;;  %v1456_v6 = vld [vmem:[#allocation10 + $0xe0] sm:$0xff]   ;;  %v1463_v13 = vld [vmem:[#allocation10 + $0x50] sm:$0xff]   ;;  %p1615_p13 = pnand %p1614_p7, %p2024_p10  ;;  %s1617_s19 = sshll.u32 %s1701_s14, 4  ;;  %s1618_s19 = int_to_ptr.vmem [resolvable:$false] %s1617_s19 }
  0x95   : > { %638 = vmatprep.subr.bf16.mxu1 %v1421_v21  ;;  %v1457_v7 = vld [vmem:[#allocation10 + $0x20] sm:$0xff]   ;;  %v1459_v9 = vld [vmem:[#allocation10 + $0x58] sm:$0xff]   ;;  %v1464_v14 = vld [vmem:[#allocation10 + $0xd0] sm:$0xff]   ;;  %s1619_s25 = scalar_lea.vmem %s1618_s19, 256  ;;  %p1620_p1 = scmp.lt.s32.totalorder %s1059_s17, %s1618_s19 }
  0x96   : > { %v1458_v8 = vld [vmem:[#allocation10 + $0xa0] sm:$0xff]   ;;  %v1460_v10 = vld [vmem:[#allocation10 + $0xd8] sm:$0xff]   ;;  %v1465_v15 = vld [vmem:[#allocation10 + $0x10] sm:$0xff]   ;;  %p1616_p0 = pneg %p1615_p13  ;;  %p1621_p3 = scmp.lt.s32.totalorder %s1619_s25, %s1613_s30 }
  0x97   : > { %598 = vmatpush1.bf16.msra.mxu0 %v1423_v22  ;;  %v1461_v11 = vld [vmem:[#allocation10 + $0x18] sm:$0xff]   ;;  %v1466_v16 = vld [vmem:[#allocation10 + $0x90] sm:$0xff]   ;;  %v1467_v17 = vld [vmem:[#allocation10 + $0x48] sm:$0xff]  }
  0x98   : > { %639 = vmatpush1.bf16.msra.mxu1 %v1424_v23  ;;  %599 = vmatprep.subr.bf16.mxu0 %v1425_v24  ;;  %v1462_v12 = vld [vmem:[#allocation10 + $0x98] sm:$0xff]   ;;  %v1468_v18 = vld [vmem:[#allocation10 + $0xc8] sm:$0xff]   ;;  %v1471_v21 = vld [vmem:[#allocation10 + $0x40] sm:$0xff]   ;;  %p1622_p5 = por %p1621_p3, %p1620_p1 }
  0x99   : > { %640 = vmatprep.subr.bf16.mxu1 %v1427_v25  ;;  %v1469_v19 = vld [vmem:[#allocation10 + $0x8] sm:$0xff]   ;;  %v1472_v22 = vld [vmem:[#allocation10 + $0xc0] sm:$0xff]   ;;  %v419_v25 = vsub.s32 2, %v1927_v47 }
  0x9a   : > { %v1470_v20 = vld [vmem:[#allocation10 + $0x88] sm:$0xff]   ;;  %v1473_v23 = vld [vmem:[#allocation10] sm:$0xff]   ;;  %p1623_p9 = pnand %p1622_p5, %p1616_p0 }
  0x9b   : > { %600 = vmatpush1.bf16.msra.mxu0 %v1429_v26  ;;  %v1474_v24 = vld [vmem:[#allocation10 + $0x80] sm:$0xff]   ;;  %v407_v26 = vld [vmem:[%s1998_s4] sm:$0xf] }
  0x9c   : > { %641 = vmatpush1.bf16.msra.mxu1 %v1430_v27  ;;  %601 = vmatprep.subr.bf16.mxu0 %v1431_v28  ;;  %v423_v27 = vsub.s32 3, %v1927_v47  ;;  %v412_v28 = vrot.slane %v407_v26, %v366_v48 }
  0x9d   : > { %642 = vmatprep.subr.bf16.mxu1 %v1433_v29  ;;  %v420_v29 = vrot.slane %v407_v26, %v419_v25 }
  0x9f   : > { %602 = vmatpush1.bf16.msra.mxu0 %v1435_v30  ;;  %v416_v30 = vrot.slane %v407_v26, %v371_v50 }
  0xa0   : > { %643 = vmatpush1.bf16.msra.mxu1 %v1436_v31  ;;  %603 = vmatprep.subr.bf16.mxu0 %v1437_v33  ;;  %v424_v31 = vrot.slane %v407_v26, %v423_v27 }
  0xa1   : > { %644 = vmatprep.subr.bf16.mxu1 %v1439_v34 }
  0xa3   : > { %604 = vmatpush1.bf16.msra.mxu0 %v1441_v35 }
  0xa4   : > { %645 = vmatpush1.bf16.msra.mxu1 %v1442_v36  ;;  %1264 = vmatprep.subr.bf16.mxu0 %v1443_v37 }
  0xa5   : > { %1286 = vmatprep.subr.bf16.mxu1 %v1444_v38 }
 0x110   : > { %v351_v39 = vpop.xlane.xlu0 %350 }
 0x111   : > { %v353_v40 = vmul.f32 0.0078125, %v351_v39 }
 0x113   : > { %v358_v42 = vmul.f32 %v353_v40, %v353_v40  ;;  %v360_v51 = vsub.f32 %v1922_v2, %v353_v40  ;;  %v1452_v2 = vld [vmem:[#allocation10 + $0xe8] sm:$0xff]  }
 0x114   : > { %v356_v41 = vpop.xlane.xlu0 %355 }
 0x115   : > { %v357_v43 = vmul.f32 0.0078125, %v356_v41 }
 0x117   : > { %v359_v44 = vsub.f32 %v357_v43, %v358_v42 }
 0x119   : > { %v361_v45 = vadd.f32 1e-05, %v359_v44 }
 0x11b   : > { %1475 = vrsqrt.f32 %v361_v45 }
 0x128   : > { %v1476_v53 = vpop.eup %1475 }
 0x129   : > { %v363_v54 = vmul.f32 %v1476_v53, %v360_v51 }
 0x12b   : > { %v368_v56 = vmul.f32 %v367_v52, %v363_v54 }
 0x12d   : > { %v1940_v57 = vadd.f32 %v372_v55, %v368_v56  ;;  %v746_v56 = vrot.slane %v1930_v49, %v419_v25 }
 0x12f   : > { %v374_v60 = vpack.c.bf16 %v1940_v57, %v1940_v57 }
 0x131   : > { %622 = vmatmul.mubr.bf16.vlgmr.msra.gmra.mxu0 %v374_v60  ;;  %663 = vmatmul.mubr.bf16.vlgmr.msra.gmra.mxu1 %v374_v60 }
 0x132   : > { %1265 = vmatpush3.bf16.msra.mxu0 %v1445_v58  ;;  %1287 = vmatpush3.bf16.msra.mxu1 %v1446_v59 }
 0x133   : > { %1266 = vmatprep.subr.bf16.mxu0 %v1447_v61  ;;  %1288 = vmatprep.subr.bf16.mxu1 %v1448_v62 }
 0x136   : > { %1267 = vmatpush3.bf16.msra.mxu0 %v1449_v63  ;;  %1289 = vmatpush3.bf16.msra.mxu1 %v1450_v0 }
 0x137   : > { %1268 = vmatprep.subr.bf16.mxu0 %v1451_v1  ;;  %1290 = vmatprep.subr.bf16.mxu1 %v1452_v2 }
 0x13a   : > { %1269 = vmatpush3.bf16.msra.mxu0 %v1453_v3  ;;  %1291 = vmatpush3.bf16.msra.mxu1 %v1454_v4 }
 0x13b   : > { %1270 = vmatprep.subr.bf16.mxu0 %v1455_v5  ;;  %1292 = vmatprep.subr.bf16.mxu1 %v1456_v6 }
 0x13e   : > { %1271 = vmatpush3.bf16.msra.mxu0 %v1457_v7  ;;  %1293 = vmatpush3.bf16.msra.mxu1 %v1458_v8 }
 0x13f   : > { %1272 = vmatprep.subr.bf16.mxu0 %v1459_v9  ;;  %1294 = vmatprep.subr.bf16.mxu1 %v1460_v10 }
 0x142   : > { %1273 = vmatpush3.bf16.msra.mxu0 %v1461_v11  ;;  %1295 = vmatpush3.bf16.msra.mxu1 %v1462_v12 }
 0x143   : > { %1274 = vmatprep.subr.bf16.mxu0 %v1463_v13  ;;  %1296 = vmatprep.subr.bf16.mxu1 %v1464_v14  ;;  %v1040_v13 = vsub.s32 4, %v1927_v47  ;;  %v1036_v14 = vrot.slane %v1930_v49, %v423_v27 }
 0x146   : > { %1275 = vmatpush3.bf16.msra.mxu0 %v1465_v15  ;;  %1297 = vmatpush3.bf16.msra.mxu1 %v1466_v16 }
 0x147   : > { %1276 = vmatprep.subr.bf16.mxu0 %v1467_v17  ;;  %1298 = vmatprep.subr.bf16.mxu1 %v1468_v18  ;;  %v1041_v17 = vrot.slane %v1930_v49, %v1040_v13 }
 0x14a   : > { %1277 = vmatpush3.bf16.msra.mxu0 %v1469_v19  ;;  %1299 = vmatpush3.bf16.msra.mxu1 %v1470_v20 }
 0x14b   : > { %1278 = vmatprep.subr.bf16.mxu0 %v1471_v21  ;;  %1300 = vmatprep.subr.bf16.mxu1 %v1472_v22 }
 0x14e   : > { %1279 = vmatpush3.bf16.msra.mxu0 %v1473_v23  ;;  %1301 = vmatpush3.bf16.msra.mxu1 %v1474_v24 }
 0x1f1   : > { %v623_v32 = vpop.f32.mrf.mxu0  ;;  %v664_v33 = vpop.f32.mrf.mxu1 }
 0x1f2   : > { %v624_v34 = vadd.f32 %v623_v32, %v412_v28  ;;  %v665_v35 = vadd.f32 %v664_v33, %v420_v29 }
 0x1f3   : > { %v625_v36 = vpop.f32.mrf.mxu0  ;;  %v666_v37 = vpop.f32.mrf.mxu1 }
 0x1f4   : > { %v626_v38 = vadd.f32 %v625_v36, %v416_v30  ;;  %v667_v39 = vadd.f32 %v666_v37, %v424_v31  ;;  %v671_v40 = vmax.f32 %v624_v34, 0.0  ;;  %v673_v41 = vmax.f32 %v665_v35, 0.0 }
 0x1f5   : > { %v627_v42 = vpop.f32.mrf.mxu0  ;;  %v668_v43 = vpop.f32.mrf.mxu1 }
 0x1f6   : > { %v672_v44 = vmax.f32 %v626_v38, 0.0  ;;  %v674_v45 = vmax.f32 %v667_v39, 0.0  ;;  %v675_v50 = vpack.c.bf16 %v671_v40, %v671_v40  ;;  %v677_v53 = vpack.c.bf16 %v673_v41, %v673_v41 }
 0x1f7   : > { %v628_v46 = vpop.f32.mrf.mxu0  ;;  %v669_v48 = vpop.f32.mrf.mxu1 }
 0x1f8   : > { %v676_v51 = vpack.c.bf16 %v672_v44, %v672_v44  ;;  %v678_v52 = vpack.c.bf16 %v674_v45, %v674_v45 }
 0x1fa   : > { %971 = vmatprep.mubr.bf16.mxu0 %v676_v51  ;;  %1011 = vmatprep.mubr.bf16.mxu1 %v678_v52 }
 0x1fb   : > { %972 = vmatmul.mubr.bf16.vlgmr.msra.gmra.mxu0 %v675_v50  ;;  %1012 = vmatmul.mubr.bf16.vlgmr.msra.gmra.mxu1 %v677_v53 }
 0x2bb   : > { %v1280_v54 = vpop.f32.mrf.mxu0  ;;  %v1302_v55 = vpop.f32.mrf.mxu1 }
 0x2bd   : > { %v1281_v58 = vpop.f32.mrf.mxu0  ;;  %v1303_v59 = vpop.f32.mrf.mxu1 }
 0x2be   : > { %v1282_v60 = vadd.f32 %v1281_v58, %v1280_v54  ;;  %v1304_v0 = vadd.f32 %v1303_v59, %v1302_v55 }
 0x2bf   : > { %v1283_v61 = vpop.f32.mrf.mxu0  ;;  %v1305_v62 = vpop.f32.mrf.mxu1 }
 0x2c0   : > { %v974_v63 = vadd.f32 %v1282_v60, %v746_v56 }
 0x2c1   : > { %v1284_v1 = vpop.f32.mrf.mxu0  ;;  %v1306_v2 = vpop.f32.mrf.mxu1 }
 0x2c2   : > { %v1014_v3 = vadd.f32 %v1304_v0, %v974_v63 }
 0x2c4   : > { %v1019_v4 = vadd.f32 %v1014_v3, %v1940_v57 }
 0x2c6   : > { %1020 = vadd.xlane.f32.xlu1 %v1019_v4  ;;  %v1023_v5 = vmul.f32 %v1019_v4, %v1019_v4 }
 0x2ca   : > { %1024 = vadd.xlane.f32.xlu1 %v1023_v5 }
 0x34f   : > { %v1021_v6 = vpop.xlane.xlu1 %1020 }
 0x350   : > { %v1022_v7 = vmul.f32 0.0078125, %v1021_v6 }
 0x352   : > { %v1027_v9 = vmul.f32 %v1022_v7, %v1022_v7  ;;  %v1029_v57 = vsub.f32 %v1019_v4, %v1022_v7 }
 0x353   : > { %v1025_v8 = vpop.xlane.xlu1 %1024 }
 0x354   : > { %v1026_v10 = vmul.f32 0.0078125, %v1025_v8 }
 0x356   : > { %v1028_v11 = vsub.f32 %v1026_v10, %v1027_v9 }
 0x358   : > { %v1030_v12 = vadd.f32 1e-05, %v1028_v11 }
 0x35a   : > { %1477 = vrsqrt.f32 %v1030_v12 }
 0x367   : > { %v1478_v15 = vpop.eup %1477 }
 0x368   : > { %v1032_v16 = vmul.f32 %v1478_v15, %v1029_v57 }
 0x36a   : > { %v1037_v18 = vmul.f32 %v1036_v14, %v1032_v16 }
 0x36c   : > { %v1042_v19 = vadd.f32 %v1041_v17, %v1037_v18 }
 0x36e   : > { %1043 = vst [vmem:[%s344_s10] sm:$0xff] %v1042_v19 }
 0x36f   : > { %1626 = shalt.err (!%p1623_p9)
}
 0x370   : > { %s1627_s3 = scalar_lea.hbm %s1056_s12, 128  ;;  %s1631_s29 = scalar_lea.hbm %s2000_s6, 256 }
 0x371   : > { %p1628_p4 = scmp.ne.s32.totalorder %s1056_s12, %s1627_s3  ;;  %p1632_p6 = scmp.lt.s32.totalorder %s1056_s12, %s2000_s6 }
 0x372   : > { %p1633_p8 = scmp.lt.s32.totalorder %s1631_s29, %s1627_s3 }
 0x373   : > { %p1629_p2 = pnand %p1628_p4, %p2024_p10 }
 0x374   : > { %p1634_p12 = por %p1633_p8, %p1632_p6 }
 0x375   : > { %p1630_p11 = pneg %p1629_p2 }
 0x377   : > { %p1635_p7 = pnand %p1634_p12, %p1630_p11 }
 0x379   : > { %1638 = shalt.err (!%p1635_p7)
}
 0x37a   : > { %1324 = dma.vmem_to_hbm [thread:$0]  (%p2024_p10), %s1059_s17, 128, %s1056_s12, %s1045_s20  }
 0x37b PF: > { %s1070_s27 = sand.u32 1, %s1677_s21   ;;  %p2025_p13 = scmp.ne.s32.totalorder %s2009_s28, 0 }
 0x37c   : > { %p2026_p0 = scmp.ge.s32.totalorder %s1689_s24, 2  ;;  %s1071_s5 = scalar_lea.sflag [#allocation4], %s1070_s27 }
 0x37e   : > { %p1344_p1 = pnand %p2026_p0, %p2025_p13 }
 0x380   : > { %p1345_p3 = pneg %p1344_p1 }
 0x382   : > { %1672 = dma.done.wait (%p1345_p3), %s1071_s5, 128  }
 0x383   : > { %1674 = vsyncadd (%p1345_p3), %s1071_s5, 4294967168  ;;  %p23_p5 = scmp.ge.s32.totalorder %s1817_s11, 4   ;;  %s2027_s21 = smov %s1681_s22 }
 0x384   : > { %s2028_s22 = smov %s1685_s23  ;;  %s2029_s23 = smov %s1827_s15 }
 0x385   : > { %s2030_s24 = smov %s1817_s11  ;;  %25 = sbr.rel (!%p23_p5) target bundleno = 12 (0xc), region = 114 }
 0x38a   :  { %1076 = vsyncpa [#allocation3], 1 }
 0x38b   :  { %1078 = vsyncpa [#allocation3 + $0x1], 1 }
 0x38c   :  { %1079 = vsyncpa [#allocation6], 1 }
 0x38d   :  { %1081 = vsyncpa [#allocation6 + $0x1], 1 }
 0x38e   :  { %1082 = vsyncpa [#allocation9], 1 }
 0x38f   :  { %1083 = vsyncpa [#allocation4], 1 }
 0x390   :  { %1085 = vsyncpa [#allocation4 + $0x1], 1 }

</bundles_post_ra>
